<compile_context>
chip_gen: v7x
topology: tpu7x:2x2x1
jax: 0.10.0
libtpu: 0.0.40
codegen_flags: <defaults>
</compile_context>

<pallas_src>
import functools

import jax
import jax.numpy as jnp
from jax import lax
from jax.experimental import pallas as pl
from jax.experimental.pallas import tpu as pltpu

NEG_SLOPE = 0.2  # PyG GATConv default LeakyReLU slope


def _round_up(x, m):
    return ((x + m - 1) // m) * m


# ---------------------------------------------------------------------------
# Kernel
# ---------------------------------------------------------------------------

def two_layer_gat_kernel(seed_ref, x_ref, adj_ref,
                         w1_ref, a1s_ref, a1d_ref, b1_ref,
                         w2_ref, a2s_ref, a2d_ref, b2_ref,
                         out_ref, h1_scratch,
                         *, heads1, heads2, hid, out_pad, drpt, training):
    x = x_ref[...]

    # adj must be a {0,1} mask with self-loops (PyG default) — rows with no
    # incoming edge would otherwise softmax uniformly, not match PyG.
    # Hoisted once, shared by both layers: 0 on edges, -1e30 on non-edges.
    # exp(logit - 1e30 - m) underflows to exactly 0, so no extra * adj needed.
    neg_bias = (adj_ref[...] - 1.0) * 1e30

    contract_last = (((1,), (1,)), ((), ()))  # A(m,k) . B(n,k)^T on the MXU

    def gat_layer(feat, w, a_src_blk, a_dst_blk, bias, heads, f_out, write):
        # One fused projection for all heads: head h lives in columns
        # [h*f_out, (h+1)*f_out) of hfeat.
        hfeat = jnp.dot(feat, w, preferred_element_type=jnp.float32)          # (N, H*f_out)
        # Attention coefficients via the MXU (block-diagonal att matrices):
        # replaces per-head VPU mult + XLU lane-reduce + XLU transpose.
        e_src_rows = lax.dot_general(a_src_blk, hfeat, contract_last,
                                     preferred_element_type=jnp.float32)      # (H, N)
        e_dst_cols = lax.dot_general(hfeat, a_dst_blk, contract_last,
                                     preferred_element_type=jnp.float32)      # (N, H)
        for h in range(heads):  # static unroll; heads is tiny & compile-time
            logits = e_dst_cols[:, h:h + 1] + e_src_rows[h:h + 1, :]          # (N_t, N_s)
            logits = jnp.where(logits >= 0, logits, NEG_SLOPE * logits)       # LeakyReLU
            masked = logits + neg_bias
            m = jnp.max(masked, axis=-1, keepdims=True)
            p = jnp.exp(masked - m)                                           # 0 on non-edges
            denom = jnp.sum(p, axis=-1, keepdims=True)                        # >= 1 (self-loop)
            alpha = p * pl.reciprocal(denom, approx=True)                     # EUP, not VALU div
            out_h = jnp.dot(alpha, hfeat[:, h * f_out:(h + 1) * f_out],
                            preferred_element_type=jnp.float32)               # (N, f_out)
            write(h, out_h + bias[:, h * f_out:(h + 1) * f_out])

    # ---------------- conv1 ----------------
    def write1(h, v):  # static-slice writes into scratch -> no concatenate
        h1_scratch[:, h * hid:(h + 1) * hid] = v

    gat_layer(x, w1_ref[...], a1s_ref[...], a1d_ref[...], b1_ref[...],
              heads1, hid, write1)

    h1 = jnp.maximum(h1_scratch[...], 0.0)                                    # ReLU
    if training and drpt > 0.0:
        # TODO(synk): TPU HW PRNG seeded from a runtime scalar; deterministic
        # per seed but does not bit-match torch's RNG stream.
        pltpu.prng_seed(seed_ref[0])
        bits = pltpu.prng_random_bits(h1.shape)
        u = jnp.bitwise_and(bits, (1 << 23) - 1).astype(jnp.float32) * (1.0 / (1 << 23))
        h1 = jnp.where(u >= drpt, h1 * (1.0 / (1.0 - drpt)), 0.0)

    # ---------------- conv2 ----------------
    # Per-head out channels are zero-padded to a multiple of 128 lanes in the
    # wrapper, so every store here is a lane-dense (unmasked) vst.
    def write2(h, v):
        out_ref[:, h * out_pad:(h + 1) * out_pad] = v.astype(out_ref.dtype)

    gat_layer(h1, w2_ref[...], a2s_ref[...], a2d_ref[...], b2_ref[...],
              heads2, out_pad, write2)


# ---------------------------------------------------------------------------
# Wrapper: fuse/pad PyG-style params and call the kernel.
# ---------------------------------------------------------------------------

def _fuse_gat_params(w, a_src, a_dst, bias, f_pad=None):
    """PyG per-head params -> fused (optionally lane-padded) layout.

    w:     (heads, f_in, f_out) -> (f_in, heads*f_pad)
    a_src: (heads, 1, f_out)    -> block-diagonal (heads, heads*f_pad)
    a_dst: (heads, 1, f_out)    -> block-diagonal (heads, heads*f_pad)
    bias:  (1, heads*f_out)     -> (1, heads*f_pad)
    """
    heads, f_in, f_out = w.shape
    if f_pad is None:
        f_pad = f_out

    w_p = jnp.zeros((heads, f_in, f_pad), jnp.float32).at[:, :, :f_out].set(w)
    w_fused = jnp.transpose(w_p, (1, 0, 2)).reshape(f_in, heads * f_pad)

    def blockdiag(a):
        m = jnp.zeros((heads, heads, f_pad), jnp.float32)
        m = m.at[jnp.arange(heads), jnp.arange(heads), :f_out].set(a[:, 0, :])
        return m.reshape(heads, heads * f_pad)

    b = bias.reshape(heads, f_out)
    b_p = jnp.zeros((heads, f_pad), jnp.float32).at[:, :f_out].set(b)
    return w_fused, blockdiag(a_src), blockdiag(a_dst), b_p.reshape(1, heads * f_pad)


def two_layer_gat(x, adj, params, *, heads1, heads2, drpt=0.0, training=False, seed=0):
    """adj[t, s] must be a dense {0,1} mask (edge s->t) including self-loops."""
    n = x.shape[0]
    hid = params["w1"].shape[-1]
    out_ch = params["w2"].shape[-1]
    out_pad = _round_up(out_ch, 128)  # lane-dense output store

    w1, a1s, a1d, b1 = _fuse_gat_params(params["w1"], params["a1s"], params["a1d"], params["b1"])
    w2, a2s, a2d, b2 = _fuse_gat_params(params["w2"], params["a2s"], params["a2d"], params["b2"],
                                        f_pad=out_pad)

    args = (x, adj, w1, a1s, a1d, b1, w2, a2s, a2d, b2)
    seed_arr = jnp.full((1,), seed, dtype=jnp.int32)

    def full_spec(a):
        nd = a.ndim
        return pl.BlockSpec(a.shape, lambda i, _seed, _nd=nd: (0,) * _nd)

    kernel = functools.partial(two_layer_gat_kernel, heads1=heads1, heads2=heads2,
                               hid=hid, out_pad=out_pad,
                               drpt=float(drpt), training=bool(training))

    # TODO(synk): for large graphs (N >~ 256) split per layer and tile a grid
    # over target-row blocks (adj BlockSpec (rows, N), "parallel") to stay
    # within v7x's 64 MiB VMEM and use both TensorCores; also batch graphs on a
    # leading grid axis if the workload is many small graphs. At N=32 a single
    # fused full-array block is latency-optimal and fits VMEM on v5e/v6e/v7x.
    out_p = pl.pallas_call(
        kernel,
        out_shape=jax.ShapeDtypeStruct((n, heads2 * out_pad), jnp.float32),
        grid_spec=pltpu.PrefetchScalarGridSpec(
            num_scalar_prefetch=1,
            grid=(1,),
            in_specs=[full_spec(a) for a in args],
            out_specs=pl.BlockSpec((n, heads2 * out_pad), lambda i, _seed: (0, 0)),
            scratch_shapes=[pltpu.VMEM((n, heads1 * hid), jnp.float32)],
        ),
        compiler_params=pltpu.CompilerParams(dimension_semantics=("arbitrary",)),
    )(seed_arr, *args)

    # Strip lane padding: real channels of head h are the first out_ch columns
    # of its out_pad-wide block.
    if heads2 == 1:
        return out_p[:, :out_ch]
    return jnp.concatenate(
        [out_p[:, h * out_pad: h * out_pad + out_ch] for h in range(heads2)], axis=-1)


# ---------------------------------------------------------------------------
# Parameter init (deterministic, PyG GATConv shapes) + pure-JAX reference.
# ---------------------------------------------------------------------------

def glorot(key, shape, fan_in, fan_out):
    lim = (6.0 / (fan_in + fan_out)) ** 0.5
    return jax.random.uniform(key, shape, jnp.float32, -lim, lim)


def init_params(key, in_ch, hid_ch, out_ch, heads, out_heads):
    ks = jax.random.split(key, 8)
    return {
        "w1":  glorot(ks[0], (heads, in_ch, hid_ch), in_ch, heads * hid_ch),
        "a1s": glorot(ks[1], (heads, 1, hid_ch), hid_ch, hid_ch),
        "a1d": glorot(ks[2], (heads, 1, hid_ch), hid_ch, hid_ch),
        "b1":  0.1 * jax.random.normal(ks[3], (1, heads * hid_ch), jnp.float32),
        "w2":  glorot(ks[4], (out_heads, heads * hid_ch, out_ch), heads * hid_ch, out_heads * out_ch),
        "a2s": glorot(ks[5], (out_heads, 1, out_ch), out_ch, out_ch),
        "a2d": glorot(ks[6], (out_heads, 1, out_ch), out_ch, out_ch),
        "b2":  0.1 * jax.random.normal(ks[7], (1, out_heads * out_ch), jnp.float32),
    }


def gat_layer_ref(x, adj, w, a_s, a_d, b, heads):
    outs = []
    for h in range(heads):
        hf = x @ w[h]
        es = (hf * a_s[h]).sum(-1, keepdims=True)
        ed = (hf * a_d[h]).sum(-1, keepdims=True)
        lg = ed + es.T
        lg = jnp.where(lg >= 0, lg, NEG_SLOPE * lg)
        mk = jnp.where(adj > 0, lg, -1e30)
        p = jnp.exp(mk - mk.max(-1, keepdims=True)) * adj
        alpha = p / p.sum(-1, keepdims=True)
        outs.append(alpha @ hf)
    return (jnp.concatenate(outs, -1) if heads > 1 else outs[0]) + b


def two_layer_gat_ref(x, adj, params, heads1, heads2):
    h = gat_layer_ref(x, adj, params["w1"], params["a1s"], params["a1d"], params["b1"], heads1)
    h = jnp.maximum(h, 0.0)  # dropout: eval mode -> identity
    return gat_layer_ref(h, adj, params["w2"], params["a2s"], params["a2d"], params["b2"], heads2)


if __name__ == "__main__":
    N, IN_CH, HID_CH, OUT_CH, HEADS, OUT_HEADS, E = 32, 16, 16, 8, 2, 1, 64

    key = jax.random.PRNGKey(0)
    kx, ke, kp = jax.random.split(key, 3)

    x = jax.random.normal(kx, (N, IN_CH), jnp.float32)
    edge_index = jax.random.randint(ke, (2, E), 0, N)  # [src; dst], PyG convention

    # Dense adjacency: adj[t, s] = 1 for edge s->t, plus self-loops (GATConv default).
    adj = jnp.zeros((N, N), jnp.float32)
    adj = adj.at[edge_index[1], edge_index[0]].set(1.0)
    adj = adj.at[jnp.arange(N), jnp.arange(N)].set(1.0)

    params = init_params(kp, IN_CH, HID_CH, OUT_CH, HEADS, OUT_HEADS)

    out = two_layer_gat(x, adj, params, heads1=HEADS, heads2=OUT_HEADS,
                        drpt=0.5, training=False)
    out = jax.block_until_ready(out)

    ref = two_layer_gat_ref(x, adj, params, HEADS, OUT_HEADS)
    assert out.shape == (N, OUT_HEADS * OUT_CH)
    # Tolerance relaxed vs exact-divide reference because the kernel uses the
    # EUP approximate reciprocal for the softmax denominator (per perf review).
    assert jnp.allclose(out, ref, atol=2e-2, rtol=2e-2), "Pallas kernel mismatch vs JAX reference"

    print("KERNEL_OK")
</pallas_src>

<mosaic_0001>
module attributes {stable_mosaic.version = 11 : i64} {
  func.func @two_layer_gat_kernel(%arg0: i32, %arg1: memref<1xi32, #tpu.memory_space<smem>>, %arg2: memref<32x16xf32, #tpu.memory_space<vmem>>, %arg3: memref<32x32xf32, #tpu.memory_space<vmem>>, %arg4: memref<16x32xf32, #tpu.memory_space<vmem>>, %arg5: memref<2x32xf32, #tpu.memory_space<vmem>>, %arg6: memref<2x32xf32, #tpu.memory_space<vmem>>, %arg7: memref<1x32xf32, #tpu.memory_space<vmem>>, %arg8: memref<32x128xf32, #tpu.memory_space<vmem>>, %arg9: memref<1x128xf32, #tpu.memory_space<vmem>>, %arg10: memref<1x128xf32, #tpu.memory_space<vmem>>, %arg11: memref<1x128xf32, #tpu.memory_space<vmem>>, %arg12: memref<32x128xf32, #tpu.memory_space<vmem>>, %arg13: memref<32x32xf32, #tpu.memory_space<vmem>>) attributes {dimension_semantics = [#tpu.dimension_semantics<arbitrary>], iteration_bounds = array<i64: 1>, scalar_prefetch = 1 : i64, scratch_operands = 1 : i64, tpu.core_type = #tpu.core_type<tc>, window_params = [{pipeline_mode = #tpu.pipeline_mode<synchronous>, transform_indices = @transform_0, window_bounds = array<i64: 32, 16>}, {pipeline_mode = #tpu.pipeline_mode<synchronous>, transform_indices = @transform_1, window_bounds = array<i64: 32, 32>}, {pipeline_mode = #tpu.pipeline_mode<synchronous>, transform_indices = @transform_2, window_bounds = array<i64: 16, 32>}, {pipeline_mode = #tpu.pipeline_mode<synchronous>, transform_indices = @transform_3, window_bounds = array<i64: 2, 32>}, {pipeline_mode = #tpu.pipeline_mode<synchronous>, transform_indices = @transform_4, window_bounds = array<i64: 2, 32>}, {pipeline_mode = #tpu.pipeline_mode<synchronous>, transform_indices = @transform_5, window_bounds = array<i64: 1, 32>}, {pipeline_mode = #tpu.pipeline_mode<synchronous>, transform_indices = @transform_6, window_bounds = array<i64: 32, 128>}, {pipeline_mode = #tpu.pipeline_mode<synchronous>, transform_indices = @transform_7, window_bounds = array<i64: 1, 128>}, {pipeline_mode = #tpu.pipeline_mode<synchronous>, transform_indices = @transform_8, window_bounds = array<i64: 1, 128>}, {pipeline_mode = #tpu.pipeline_mode<synchronous>, transform_indices = @transform_9, window_bounds = array<i64: 1, 128>}, {pipeline_mode = #tpu.pipeline_mode<synchronous>, transform_indices = @transform_10, window_bounds = array<i64: 32, 128>}]} {
    %c0 = arith.constant 0 : index
    %c0_0 = arith.constant 0 : index
    %0 = vector.load %arg2[%c0, %c0_0] : memref<32x16xf32, #tpu.memory_space<vmem>>, vector<32x16xf32>
    %c0_1 = arith.constant 0 : index
    %c0_2 = arith.constant 0 : index
    %1 = vector.load %arg3[%c0_1, %c0_2] : memref<32x32xf32, #tpu.memory_space<vmem>>, vector<32x32xf32>
    %cst = arith.constant 1.000000e+00 : f32
    %2 = vector.broadcast %cst : f32 to vector<32x32xf32>
    %3 = arith.subf %1, %2 : vector<32x32xf32>
    %cst_3 = arith.constant 1.000000e+30 : f32
    %4 = vector.broadcast %cst_3 : f32 to vector<32x32xf32>
    %5 = arith.mulf %3, %4 : vector<32x32xf32>
    %c0_4 = arith.constant 0 : index
    %c0_5 = arith.constant 0 : index
    %6 = vector.load %arg4[%c0_4, %c0_5] : memref<16x32xf32, #tpu.memory_space<vmem>>, vector<16x32xf32>
    %c0_6 = arith.constant 0 : index
    %c0_7 = arith.constant 0 : index
    %7 = vector.load %arg5[%c0_6, %c0_7] : memref<2x32xf32, #tpu.memory_space<vmem>>, vector<2x32xf32>
    %c0_8 = arith.constant 0 : index
    %c0_9 = arith.constant 0 : index
    %8 = vector.load %arg6[%c0_8, %c0_9] : memref<2x32xf32, #tpu.memory_space<vmem>>, vector<2x32xf32>
    %c0_10 = arith.constant 0 : index
    %c0_11 = arith.constant 0 : index
    %9 = vector.load %arg7[%c0_10, %c0_11] : memref<1x32xf32, #tpu.memory_space<vmem>>, vector<1x32xf32>
    %cst_12 = arith.constant dense<0.000000e+00> : vector<32x32xf32>
    %10 = tpu.matmul %0, %6, %cst_12 {dimension_numbers = #tpu.dot_dimension_numbers<[1], [0], [0], [1], [0, 0, 1, 1], [], []>} : vector<32x16xf32>, vector<16x32xf32>, vector<32x32xf32> -> vector<32x32xf32>
    %cst_13 = arith.constant dense<0.000000e+00> : vector<2x32xf32>
    %11 = tpu.matmul %7, %10, %cst_13 {dimension_numbers = #tpu.dot_dimension_numbers<[1], [1], [0], [0], [0, 0, 1, 0], [], []>} : vector<2x32xf32>, vector<32x32xf32>, vector<2x32xf32> -> vector<2x32xf32>
    %cst_14 = arith.constant dense<0.000000e+00> : vector<32x2xf32>
    %12 = tpu.matmul %10, %8, %cst_14 {dimension_numbers = #tpu.dot_dimension_numbers<[1], [1], [0], [0], [0, 0, 1, 0], [], []>} : vector<32x32xf32>, vector<2x32xf32>, vector<32x2xf32> -> vector<32x2xf32>
    %13 = vector.extract_strided_slice %12 {offsets = [0, 0], sizes = [32, 1], strides = [1, 1]} : vector<32x2xf32> to vector<32x1xf32>
    %14 = vector.extract_strided_slice %11 {offsets = [0, 0], sizes = [1, 32], strides = [1, 1]} : vector<2x32xf32> to vector<1x32xf32>
    %15 = vector.broadcast %13 : vector<32x1xf32> to vector<32x32xf32>
    %16 = vector.broadcast %14 : vector<1x32xf32> to vector<32x32xf32>
    %17 = arith.addf %15, %16 : vector<32x32xf32>
    %cst_15 = arith.constant 0.000000e+00 : f32
    %18 = vector.broadcast %cst_15 : f32 to vector<32x32xf32>
    %19 = arith.cmpf oge, %17, %18 : vector<32x32xf32>
    %cst_16 = arith.constant 2.000000e-01 : f32
    %20 = vector.broadcast %cst_16 : f32 to vector<32x32xf32>
    %21 = arith.mulf %20, %17 : vector<32x32xf32>
    %22 = arith.select %19, %17, %21 : vector<32x32xi1>, vector<32x32xf32>
    %23 = arith.addf %22, %5 : vector<32x32xf32>
    %cst_17 = arith.constant dense<0xFF800000> : vector<32xf32>
    %24 = vector.multi_reduction <maximumf>, %23, %cst_17 [1] : vector<32x32xf32> to vector<32xf32>
    %25 = vector.shape_cast %24 : vector<32xf32> to vector<32x1xf32>
    %26 = vector.broadcast %25 : vector<32x1xf32> to vector<32x32xf32>
    %27 = arith.subf %23, %26 : vector<32x32xf32>
    %28 = math.exp %27 : vector<32x32xf32>
    %cst_18 = arith.constant dense<0.000000e+00> : vector<32xf32>
    %29 = vector.multi_reduction <add>, %28, %cst_18 [1] : vector<32x32xf32> to vector<32xf32>
    %30 = vector.shape_cast %29 : vector<32xf32> to vector<32x1xf32>
    %31 = tpu.reciprocal %30 {approx = true} : vector<32x1xf32> -> vector<32x1xf32>
    %32 = vector.broadcast %31 : vector<32x1xf32> to vector<32x32xf32>
    %33 = arith.mulf %28, %32 : vector<32x32xf32>
    %34 = vector.extract_strided_slice %10 {offsets = [0, 0], sizes = [32, 16], strides = [1, 1]} : vector<32x32xf32> to vector<32x16xf32>
    %cst_19 = arith.constant dense<0.000000e+00> : vector<32x16xf32>
    %35 = tpu.matmul %33, %34, %cst_19 {dimension_numbers = #tpu.dot_dimension_numbers<[1], [0], [0], [1], [0, 0, 1, 1], [], []>} : vector<32x32xf32>, vector<32x16xf32>, vector<32x16xf32> -> vector<32x16xf32>
    %36 = vector.extract_strided_slice %9 {offsets = [0, 0], sizes = [1, 16], strides = [1, 1]} : vector<1x32xf32> to vector<1x16xf32>
    %37 = vector.broadcast %36 : vector<1x16xf32> to vector<32x16xf32>
    %38 = arith.addf %35, %37 : vector<32x16xf32>
    %c0_20 = arith.constant 0 : index
    %c0_21 = arith.constant 0 : index
    %39 = vector.load %arg13[%c0_20, %c0_21] : memref<32x32xf32, #tpu.memory_space<vmem>>, vector<32x16xf32>
    tpu.vector_store %arg13[%c0_20, %c0_21], %38 {strides = array<i32>} : memref<32x32xf32, #tpu.memory_space<vmem>>, vector<32x16xf32>,
    %40 = vector.extract_strided_slice %12 {offsets = [0, 1], sizes = [32, 1], strides = [1, 1]} : vector<32x2xf32> to vector<32x1xf32>
    %41 = vector.extract_strided_slice %11 {offsets = [1, 0], sizes = [1, 32], strides = [1, 1]} : vector<2x32xf32> to vector<1x32xf32>
    %42 = vector.broadcast %40 : vector<32x1xf32> to vector<32x32xf32>
    %43 = vector.broadcast %41 : vector<1x32xf32> to vector<32x32xf32>
    %44 = arith.addf %42, %43 : vector<32x32xf32>
    %cst_22 = arith.constant 0.000000e+00 : f32
    %45 = vector.broadcast %cst_22 : f32 to vector<32x32xf32>
    %46 = arith.cmpf oge, %44, %45 : vector<32x32xf32>
    %cst_23 = arith.constant 2.000000e-01 : f32
    %47 = vector.broadcast %cst_23 : f32 to vector<32x32xf32>
    %48 = arith.mulf %47, %44 : vector<32x32xf32>
    %49 = arith.select %46, %44, %48 : vector<32x32xi1>, vector<32x32xf32>
    %50 = arith.addf %49, %5 : vector<32x32xf32>
    %cst_24 = arith.constant dense<0xFF800000> : vector<32xf32>
    %51 = vector.multi_reduction <maximumf>, %50, %cst_24 [1] : vector<32x32xf32> to vector<32xf32>
    %52 = vector.shape_cast %51 : vector<32xf32> to vector<32x1xf32>
    %53 = vector.broadcast %52 : vector<32x1xf32> to vector<32x32xf32>
    %54 = arith.subf %50, %53 : vector<32x32xf32>
    %55 = math.exp %54 : vector<32x32xf32>
    %cst_25 = arith.constant dense<0.000000e+00> : vector<32xf32>
    %56 = vector.multi_reduction <add>, %55, %cst_25 [1] : vector<32x32xf32> to vector<32xf32>
    %57 = vector.shape_cast %56 : vector<32xf32> to vector<32x1xf32>
    %58 = tpu.reciprocal %57 {approx = true} : vector<32x1xf32> -> vector<32x1xf32>
    %59 = vector.broadcast %58 : vector<32x1xf32> to vector<32x32xf32>
    %60 = arith.mulf %55, %59 : vector<32x32xf32>
    %61 = vector.extract_strided_slice %10 {offsets = [0, 16], sizes = [32, 16], strides = [1, 1]} : vector<32x32xf32> to vector<32x16xf32>
    %cst_26 = arith.constant dense<0.000000e+00> : vector<32x16xf32>
    %62 = tpu.matmul %60, %61, %cst_26 {dimension_numbers = #tpu.dot_dimension_numbers<[1], [0], [0], [1], [0, 0, 1, 1], [], []>} : vector<32x32xf32>, vector<32x16xf32>, vector<32x16xf32> -> vector<32x16xf32>
    %63 = vector.extract_strided_slice %9 {offsets = [0, 16], sizes = [1, 16], strides = [1, 1]} : vector<1x32xf32> to vector<1x16xf32>
    %64 = vector.broadcast %63 : vector<1x16xf32> to vector<32x16xf32>
    %65 = arith.addf %62, %64 : vector<32x16xf32>
    %c0_27 = arith.constant 0 : index
    %c16 = arith.constant 16 : index
    %66 = vector.load %arg13[%c0_27, %c16] : memref<32x32xf32, #tpu.memory_space<vmem>>, vector<32x16xf32>
    tpu.vector_store %arg13[%c0_27, %c16], %65 {strides = array<i32>} : memref<32x32xf32, #tpu.memory_space<vmem>>, vector<32x16xf32>,
    %c0_28 = arith.constant 0 : index
    %c0_29 = arith.constant 0 : index
    %67 = vector.load %arg13[%c0_28, %c0_29] : memref<32x32xf32, #tpu.memory_space<vmem>>, vector<32x32xf32>
    %cst_30 = arith.constant 0.000000e+00 : f32
    %68 = vector.broadcast %cst_30 : f32 to vector<32x32xf32>
    %69 = arith.maximumf %67, %68 : vector<32x32xf32>
    %c0_31 = arith.constant 0 : index
    %c0_32 = arith.constant 0 : index
    %70 = vector.load %arg8[%c0_31, %c0_32] : memref<32x128xf32, #tpu.memory_space<vmem>>, vector<32x128xf32>
    %c0_33 = arith.constant 0 : index
    %c0_34 = arith.constant 0 : index
    %71 = vector.load %arg9[%c0_33, %c0_34] : memref<1x128xf32, #tpu.memory_space<vmem>>, vector<1x128xf32>
    %c0_35 = arith.constant 0 : index
    %c0_36 = arith.constant 0 : index
    %72 = vector.load %arg10[%c0_35, %c0_36] : memref<1x128xf32, #tpu.memory_space<vmem>>, vector<1x128xf32>
    %c0_37 = arith.constant 0 : index
    %c0_38 = arith.constant 0 : index
    %73 = vector.load %arg11[%c0_37, %c0_38] : memref<1x128xf32, #tpu.memory_space<vmem>>, vector<1x128xf32>
    %cst_39 = arith.constant dense<0.000000e+00> : vector<32x128xf32>
    %74 = tpu.matmul %69, %70, %cst_39 {dimension_numbers = #tpu.dot_dimension_numbers<[1], [0], [0], [1], [0, 0, 1, 1], [], []>} : vector<32x32xf32>, vector<32x128xf32>, vector<32x128xf32> -> vector<32x128xf32>
    %cst_40 = arith.constant dense<0.000000e+00> : vector<1x32xf32>
    %75 = tpu.matmul %71, %74, %cst_40 {dimension_numbers = #tpu.dot_dimension_numbers<[1], [1], [0], [0], [0, 0, 1, 0], [], []>} : vector<1x128xf32>, vector<32x128xf32>, vector<1x32xf32> -> vector<1x32xf32>
    %cst_41 = arith.constant dense<0.000000e+00> : vector<32x1xf32>
    %76 = tpu.matmul %74, %72, %cst_41 {dimension_numbers = #tpu.dot_dimension_numbers<[1], [1], [0], [0], [0, 0, 1, 0], [], []>} : vector<32x128xf32>, vector<1x128xf32>, vector<32x1xf32> -> vector<32x1xf32>
    %77 = vector.broadcast %76 : vector<32x1xf32> to vector<32x32xf32>
    %78 = vector.broadcast %75 : vector<1x32xf32> to vector<32x32xf32>
    %79 = arith.addf %77, %78 : vector<32x32xf32>
    %cst_42 = arith.constant 0.000000e+00 : f32
    %80 = vector.broadcast %cst_42 : f32 to vector<32x32xf32>
    %81 = arith.cmpf oge, %79, %80 : vector<32x32xf32>
    %cst_43 = arith.constant 2.000000e-01 : f32
    %82 = vector.broadcast %cst_43 : f32 to vector<32x32xf32>
    %83 = arith.mulf %82, %79 : vector<32x32xf32>
    %84 = arith.select %81, %79, %83 : vector<32x32xi1>, vector<32x32xf32>
    %85 = arith.addf %84, %5 : vector<32x32xf32>
    %cst_44 = arith.constant dense<0xFF800000> : vector<32xf32>
    %86 = vector.multi_reduction <maximumf>, %85, %cst_44 [1] : vector<32x32xf32> to vector<32xf32>
    %87 = vector.shape_cast %86 : vector<32xf32> to vector<32x1xf32>
    %88 = vector.broadcast %87 : vector<32x1xf32> to vector<32x32xf32>
    %89 = arith.subf %85, %88 : vector<32x32xf32>
    %90 = math.exp %89 : vector<32x32xf32>
    %cst_45 = arith.constant dense<0.000000e+00> : vector<32xf32>
    %91 = vector.multi_reduction <add>, %90, %cst_45 [1] : vector<32x32xf32> to vector<32xf32>
    %92 = vector.shape_cast %91 : vector<32xf32> to vector<32x1xf32>
    %93 = tpu.reciprocal %92 {approx = true} : vector<32x1xf32> -> vector<32x1xf32>
    %94 = vector.broadcast %93 : vector<32x1xf32> to vector<32x32xf32>
    %95 = arith.mulf %90, %94 : vector<32x32xf32>
    %cst_46 = arith.constant dense<0.000000e+00> : vector<32x128xf32>
    %96 = tpu.matmul %95, %74, %cst_46 {dimension_numbers = #tpu.dot_dimension_numbers<[1], [0], [0], [1], [0, 0, 1, 1], [], []>} : vector<32x32xf32>, vector<32x128xf32>, vector<32x128xf32> -> vector<32x128xf32>
    %97 = vector.broadcast %73 : vector<1x128xf32> to vector<32x128xf32>
    %98 = arith.addf %96, %97 : vector<32x128xf32>
    %c0_47 = arith.constant 0 : index
    %c0_48 = arith.constant 0 : index
    %99 = vector.load %arg12[%c0_47, %c0_48] : memref<32x128xf32, #tpu.memory_space<vmem>>, vector<32x128xf32>
    tpu.vector_store %arg12[%c0_47, %c0_48], %98 {strides = array<i32>} : memref<32x128xf32, #tpu.memory_space<vmem>>, vector<32x128xf32>,
    return
  }
  func.func @transform_0(%arg0: i32, %arg1: memref<1xi32, #tpu.memory_space<smem>>) -> (i32, i32) {
    %c0_i32 = arith.constant 0 : i32
    %c0_i32_0 = arith.constant 0 : i32
    %c0_i32_1 = arith.constant 0 : i32
    return %c0_i32, %c0_i32_0 : i32, i32
  }
  func.func @transform_1(%arg0: i32, %arg1: memref<1xi32, #tpu.memory_space<smem>>) -> (i32, i32) {
    %c0_i32 = arith.constant 0 : i32
    %c0_i32_0 = arith.constant 0 : i32
    %c0_i32_1 = arith.constant 0 : i32
    return %c0_i32, %c0_i32_0 : i32, i32
  }
  func.func @transform_2(%arg0: i32, %arg1: memref<1xi32, #tpu.memory_space<smem>>) -> (i32, i32) {
    %c0_i32 = arith.constant 0 : i32
    %c0_i32_0 = arith.constant 0 : i32
    %c0_i32_1 = arith.constant 0 : i32
    return %c0_i32, %c0_i32_0 : i32, i32
  }
  func.func @transform_3(%arg0: i32, %arg1: memref<1xi32, #tpu.memory_space<smem>>) -> (i32, i32) {
    %c0_i32 = arith.constant 0 : i32
    %c0_i32_0 = arith.constant 0 : i32
    %c0_i32_1 = arith.constant 0 : i32
    return %c0_i32, %c0_i32_0 : i32, i32
  }
  func.func @transform_4(%arg0: i32, %arg1: memref<1xi32, #tpu.memory_space<smem>>) -> (i32, i32) {
    %c0_i32 = arith.constant 0 : i32
    %c0_i32_0 = arith.constant 0 : i32
    %c0_i32_1 = arith.constant 0 : i32
    return %c0_i32, %c0_i32_0 : i32, i32
  }
  func.func @transform_5(%arg0: i32, %arg1: memref<1xi32, #tpu.memory_space<smem>>) -> (i32, i32) {
    %c0_i32 = arith.constant 0 : i32
    %c0_i32_0 = arith.constant 0 : i32
    %c0_i32_1 = arith.constant 0 : i32
    return %c0_i32, %c0_i32_0 : i32, i32
  }
  func.func @transform_6(%arg0: i32, %arg1: memref<1xi32, #tpu.memory_space<smem>>) -> (i32, i32) {
    %c0_i32 = arith.constant 0 : i32
    %c0_i32_0 = arith.constant 0 : i32
    %c0_i32_1 = arith.constant 0 : i32
    return %c0_i32, %c0_i32_0 : i32, i32
  }
  func.func @transform_7(%arg0: i32, %arg1: memref<1xi32, #tpu.memory_space<smem>>) -> (i32, i32) {
    %c0_i32 = arith.constant 0 : i32
    %c0_i32_0 = arith.constant 0 : i32
    %c0_i32_1 = arith.constant 0 : i32
    return %c0_i32, %c0_i32_0 : i32, i32
  }
  func.func @transform_8(%arg0: i32, %arg1: memref<1xi32, #tpu.memory_space<smem>>) -> (i32, i32) {
    %c0_i32 = arith.constant 0 : i32
    %c0_i32_0 = arith.constant 0 : i32
    %c0_i32_1 = arith.constant 0 : i32
    return %c0_i32, %c0_i32_0 : i32, i32
  }
  func.func @transform_9(%arg0: i32, %arg1: memref<1xi32, #tpu.memory_space<smem>>) -> (i32, i32) {
    %c0_i32 = arith.constant 0 : i32
    %c0_i32_0 = arith.constant 0 : i32
    %c0_i32_1 = arith.constant 0 : i32
    return %c0_i32, %c0_i32_0 : i32, i32
  }
  func.func @transform_10(%arg0: i32, %arg1: memref<1xi32, #tpu.memory_space<smem>>) -> (i32, i32) {
    %c0_i32 = arith.constant 0 : i32
    %c0_i32_0 = arith.constant 0 : i32
    %c0_i32_1 = arith.constant 0 : i32
    return %c0_i32, %c0_i32_0 : i32, i32
  }
}

</mosaic_0001>

<bundles_post_ra>
// kernel: tpu_custom_call.1
= control target key start
LH: loop header
LB: loop body
LE: loop exit
PB: predicated region body
PF: predicated region fallthrough
CT: control target
= control target key end

     0   :  { %17 = vsyncpa [#allocation6], 0  ;;  %s1863_s0 = inlined_call_operand.<no memory space> [shape: s32[1], index: 0, kind: input, shape index: {}]   ;;  %s1864_s1 = inlined_call_operand.vmem [shape: f32[32,16], index: 1, kind: input, shape index: {}]   ;;  %s1865_s2 = inlined_call_operand.vmem [shape: f32[32,32], index: 2, kind: input, shape index: {}]   ;;  %s1866_s3 = inlined_call_operand.hbm [shape: f32[16,32], index: 3, kind: input, shape index: {}]   ;;  %s1867_s4 = inlined_call_operand.vmem [shape: f32[2,32], index: 4, kind: input, shape index: {}]   ;;  %s1868_s5 = inlined_call_operand.hbm [shape: f32[2,32], index: 5, kind: input, shape index: {}]   ;;  %s1869_s6 = inlined_call_operand.vmem [shape: f32[1,32], index: 6, kind: input, shape index: {}]   ;;  %s1870_s7 = inlined_call_operand.vmem [shape: f32[32,128], index: 7, kind: input, shape index: {}]   ;;  %s1871_s8 = inlined_call_operand.vmem [shape: f32[1,128], index: 8, kind: input, shape index: {}]   ;;  %s1872_s9 = inlined_call_operand.vmem [shape: f32[1,128], index: 9, kind: input, shape index: {}]   ;;  %s1873_s10 = inlined_call_operand.vmem [shape: f32[1,128], index: 10, kind: input, shape index: {}]   ;;  %s1874_s11 = inlined_call_operand.hbm [shape: f32[32,128], index: 11, kind: output, shape index: {}]  }
   0x1   :  { %18 = vsyncpa [#allocation9], 0 }
   0x2   :  { %19 = vsyncpa [#allocation7], 0  ;;  %s1545_s16 = smov [#allocation5]   ;;  %s1473_s20 = scalar_lea.hbm %s1866_s3, 256 }
   0x3   :  { %s29_s17 = sshll.u32 %s1545_s16, 4  ;;  %p1474_p0 = scmp.ne.s32.totalorder %s1866_s3, %s1473_s20  ;;  %s30_s17 = int_to_ptr.vmem [resolvable:$true] %s29_s17 }
   0x4   :  { %p1477_p1 = scmp.lt.u32.totalorder %s1473_s20, %s1866_s3 }
   0x6   :  { %p1479_p2 = pnand %p1477_p1, %p1474_p0 }
   0x8   :  { %1482 = shalt.err (!%p1479_p2)
}
   0x9   :  { %s1483_s25 = scalar_lea.vmem %s30_s17, 256  ;;  %p1488_p4 = scmp.lt.s32.totalorder %s30_s17, %s30_s17 }
   0xa   :  { %p1484_p3 = scmp.ne.s32.totalorder %s30_s17, %s1483_s25  ;;  %p1489_p5 = scmp.lt.s32.totalorder %s1483_s25, %s1483_s25 }
   0xc   :  { %p1490_p6 = por %p1489_p5, %p1488_p4 }
   0xe   :  { %p1491_p7 = pnand %p1490_p6, %p1484_p3 }
  0x10   :  { %1494 = shalt.err (!%p1491_p7)
}
  0x11   :  { %s1546_s26 = smov 128   ;;  %s1547_s0 = smov 8  }
  0x12   :  { %35 = dma.hbm_to_vmem [thread:$0]  %s1866_s3, 256, %s30_s17, [#allocation6], %s1546_s26, %s1546_s26, %s1547_s0  }
  0x13   :  { %s1548_s29 = smov [#allocation8]   ;;  %s1495_s14 = scalar_lea.hbm %s1868_s5, 32 }
  0x14   :  { %s44_s30 = sshll.u32 %s1548_s29, 4  ;;  %p1496_p8 = scmp.ne.s32.totalorder %s1868_s5, %s1495_s14  ;;  %s45_s30 = int_to_ptr.vmem [resolvable:$true] %s44_s30 }
  0x15   :  { %p1499_p9 = scmp.lt.u32.totalorder %s1495_s14, %s1868_s5 }
  0x17   :  { %p1501_p10 = pnand %p1499_p9, %p1496_p8 }
  0x19   :  { %1504 = shalt.err (!%p1501_p10)
}
  0x1a   :  { %s1505_s20 = scalar_lea.vmem %s45_s30, 32  ;;  %p1510_p12 = scmp.lt.s32.totalorder %s45_s30, %s45_s30 }
  0x1b   :  { %p1506_p11 = scmp.ne.s32.totalorder %s45_s30, %s1505_s20  ;;  %p1511_p13 = scmp.lt.s32.totalorder %s1505_s20, %s1505_s20 }
  0x1d   :  { %p1512_p0 = por %p1511_p13, %p1510_p12 }
  0x1f   :  { %p1513_p1 = pnand %p1512_p0, %p1506_p11 }
  0x21   :  { %1516 = shalt.err (!%p1513_p1)
}
  0x22   :  { %47 = dma.hbm_to_vmem [thread:$0]  %s1868_s5, 32, %s45_s30, [#allocation9]  }
  0x23   :  { %1539 = dma.done.wait [#allocation6], 256  }
  0x24   :  { %1540 = vsyncadd [#allocation6], 4294967040 }
  0x25   :  { %1541 = dma.done.wait [#allocation9], 32  }
  0x26   :  { %1542 = vsyncadd [#allocation9], 4294967264  ;;  %vm85_vm0 = vcmask 130048   ;;  %v80_v0 = vld [vmem:[#allocation5] sm:$0xff]  ;;  %v81_v1 = vld [vmem:[#allocation5 + $0x8] sm:$0xff]  ;;  %vm183_vm1 = vcmask 261120   ;;  %v377_v28 = vlaneseq }
  0x27   :  { %v64_v2 = vld [vmem:[%s1864_s1] sm:$0xff]  ;;  %v1348_v3 = vpack.c.bf16 %v81_v1, %v80_v0  ;;  %v83_v4 = vld [vmem:[#allocation8] sm:$0x3]  ;;  %v65_v5 = vld [vmem:[%s1864_s1 + $0x8] sm:$0xff]  ;;  %v1549_v8 = vmov 0.0|0.0   ;;  %vm1550_vm2 = vmmov 0  }
  0x28   :  { %1256 = vmatprep.mubr.msk.f32.mxu0 %vm85_vm0, %v64_v2  ;;  %v66_v6 = vld [vmem:[%s1864_s1 + $0x10] sm:$0xff]  ;;  %v67_v7 = vld [vmem:[%s1864_s1 + $0x18] sm:$0xff]  ;;  %1352 = vmatprep.subr.bf16.mxu1 %v1549_v8  ;;  %v1551_v9 = vmov 0.0   ;;  %vm1671_vm3 = vmpackc.low %vm183_vm1, %vm183_vm1  ;;  %v1552_v20 = vmov 1   ;;  %v1553_v25 = vmov 0   ;;  %v1704_v29 = vshrl.u32 %v377_v28, 7 }
  0x29   :  { %1349 = vmatprep.subr.bf16.mxu0 %v1348_v3  ;;  %1270 = vmatprep.mubr.msk.f32.mxu1 %vm1550_vm2, %v1551_v9  ;;  %v82_v19 = vld [vmem:[%s1867_s4] sm:$0x3]  ;;  %v69_v34 = vld [vmem:[%s1865_s2 + $0x8] sm:$0xff]  ;;  %v70_v35 = vld [vmem:[%s1865_s2 + $0x10] sm:$0xff]  ;;  %s1555_s25 = smov 16   ;;  %vm764_vm12 = vcmask 261248  }
  0x2a   :  { %1351 = vmatpush3.bf16.msra.mxu0 %v1348_v3  ;;  %1410 = vset.pattern.permute.xlu0 %v1552_v20  ;;  %v570_v30 = vsub.s32 1, %v1704_v29  ;;  %v68_v31 = vld [vmem:[%s1865_s2] sm:$0xff]  ;;  %v1163_v39 = vadd.f32 -1.0, %v69_v34  ;;  %v1164_v40 = vadd.f32 -1.0, %v70_v35  ;;  %v71_v42 = vld [vmem:[%s1865_s2 + $0x18] sm:$0xff]  ;;  %v379_v43 = vsub.s32 0, %v1704_v29 }
  0x2b   :  { %1273 = vmatprep.subr.msk.mxu0 %vm183_vm1, %v83_v4  ;;  %1411 = vset.pattern.permute.xlu1 %v1552_v20  ;;  %v1162_v33 = vadd.f32 -1.0, %v68_v31  ;;  %v1165_v52 = vadd.f32 -1.0, %v71_v42  ;;  %s1554_s2 = smov 112   ;;  %s1556_s29 = smov [#allocation10]  }
  0x2c   :  { %v1723_v50 = vmul.f32 1e+30, %v1163_v39  ;;  %v1725_v51 = vmul.f32 1e+30, %v1164_v40  ;;  %s1149_s4 = sshll.u32 %s1556_s29, 4  ;;  %s1150_s4 = int_to_ptr.vmem [resolvable:$true] %s1149_s4 }
  0x2d   :  { %1257 = vmatmul.mubr.msk.f32.vlgmr.msra.gmra.mrb[0].mxu0 %vm85_vm0, %v65_v5  ;;  %v1716_v38 = vmul.f32 1e+30, %v1162_v33  ;;  %v1731_v0 = vmul.f32 1e+30, %v1165_v52  ;;  %s1517_s30 = scalar_lea.vmem %s1150_s4, 512  ;;  %p1522_p3 = scmp.lt.s32.totalorder %s1150_s4, %s1150_s4 }
  0x2e   :  { %1259 = vmatprep.mubr.msk.f32.mxu0 %vm85_vm0, %v66_v6  ;;  %p1518_p2 = scmp.ne.s32.totalorder %s1150_s4, %s1517_s30  ;;  %p1523_p4 = scmp.lt.s32.totalorder %s1517_s30, %s1517_s30 }
  0x30   :  { %p1524_p5 = por %p1523_p4, %p1522_p3 }
  0x31   :  { %1260 = vmatmul.mubr.msk.f32.gmra.mrb[2].mxu0 %vm85_vm0, %v67_v7 }
  0x32   :  { %p1525_p6 = pnand %p1524_p5, %p1518_p2 }
  0x33   :  { %1274 = vmatpush3.xpose.msk.msra.mxu0 %vm183_vm1, %v83_v4 }
 0x100   :  { %v1665_v10 = vpop.f32.mrb[0].mxu0 }
 0x101   :  { %v1667_v11 = vpop.f32.mrb[1].mxu0 }
 0x102   :  { %v1414_v13 = vpack.i.bf16 %v1665_v10, %v1667_v11  ;;  %v1353_v14 = vpack.c.bf16 %v1665_v10, %v1667_v11  ;;  %1275 = vmatprep.mubr.msk.f32.mxu0 %vm183_vm1, %v1667_v11 }
 0x103   :  { %1276 = vmatmul.mubr.msk.f32.vlgmr.msra.gmra.mrb[4].mxu0 %vm183_vm1, %v1665_v10 }
 0x104   :  { %v1683_v15 = vpop.f32.mrb[2].mxu0  ;;  %1355 = vmatpush3.bf16.xpose.msk.msra.mxu1 %vm1671_vm3, %v1353_v14  ;;  %1361 = vmatprep.subr.bf16.mxu0 %v1353_v14 }
 0x105   :  { %v1687_v16 = vpop.f32.mrb[3].mxu0  ;;  %1363 = vmatpush3.bf16.msra.mxu0 %v1353_v14  ;;  %1356 = vmatprep.subr.bf16.mxu1 %v1549_v8 }
 0x106   :  { %v1419_v17 = vpack.i.bf16 %v1683_v15, %v1687_v16  ;;  %v1357_v18 = vpack.c.bf16 %v1683_v15, %v1687_v16  ;;  %1278 = vmatprep.mubr.msk.f32.mxu0 %vm183_vm1, %v1687_v16 }
 0x107   :  { %1279 = vmatmul.mubr.msk.f32.gmra.mrb[6].mxu0 %vm183_vm1, %v1683_v15 }
 0x108   :  { %1365 = vmatprep.subr.bf16.mxu0 %v1357_v18 }
 0x109   :  { %1367 = vmatpush3.bf16.msra.mxu0 %v1357_v18 }
 0x10c   :  { %1359 = vmatpush3.bf16.xpose.msk.msra.mxu1 %vm1671_vm3, %v1357_v18 }
 0x113   :  { %1271 = vmatmul.mubr.msk.f32.vlgmr.msra.gmra.mrb[0].mxu1 %vm183_vm1, %v82_v19 }
 0x1d6   :  { %v1277_v21 = vpop.f32.mrb[4].mxu0 }
 0x1d7   :  { %v338_v22 = vpop.f32.mrb[5].mxu0 }
 0x1d8   :  { %553 = vperm.xlu0 %1410, %v338_v22  }
 0x1da   :  { %v1280_v23 = vpop.f32.mrb[6].mxu0 }
 0x1db   :  { %v348_v24 = vpop.f32.mrb[7].mxu0 }
 0x1dc   :  { %557 = vperm.xlu0 %1410, %v1277_v21   ;;  %561 = vperm.xlu1 %1411, %v348_v24  }
 0x1e0   :  { %1412 = vset.pattern.permute.xlu0 %v1553_v25  ;;  %565 = vperm.xlu1 %1411, %v1280_v23  }
 0x1e1   :  { %359 = vperm.xlu0 %1412, %v338_v22  }
 0x1e4   :  { %1413 = vset.pattern.permute.xlu1 %v1553_v25 }
 0x1e5   :  { %374 = vperm.xlu0 %1412, %v1280_v23   ;;  %364 = vperm.xlu1 %1413, %v1277_v21  }
 0x1e6   :  { %v265_v26 = vpop.f32.mrb[0].mxu1 }
 0x1e7   :  { %v1272_v27 = vpop.f32.mrb[1].mxu1  ;;  %v571_v32 = vrot.slane %v265_v26, %v570_v30  ;;  %v380_v55 = vrot.slane %v265_v26, %v379_v43 }
 0x1e9   :  { %369 = vperm.xlu1 %1413, %v348_v24   ;;  %1424 = vset.pattern.permute.xlu0 %v1552_v20 }
 0x257   :  { %v554_v36 = vpop.permute.xlu0 %553 }
 0x258   :  { %v572_v37 = vadd.f32 %v571_v32, %v554_v36 }
 0x25a   :  { %vm576_vm4 = vcmp.ge.f32.partialorder %v572_v37, 0.0  ;;  %v580_v41 = vmul.f32 0.2, %v572_v37 }
 0x25b   :  { %v558_v44 = vpop.permute.xlu0 %557  ;;  %v562_v45 = vpop.permute.xlu1 %561 }
 0x25c   :  { %v573_v46 = vadd.f32 %v571_v32, %v558_v44  ;;  %v574_v47 = vadd.f32 %v571_v32, %v562_v45  ;;  %v584_v48 = vsel %vm576_vm4, %v572_v37, %v580_v41 }
 0x25d   :  { %v588_v49 = vadd.f32 %v584_v48, %v1716_v38 }
 0x25e   :  { %vm577_vm5 = vcmp.ge.f32.partialorder %v573_v46, 0.0  ;;  %v581_v53 = vmul.f32 0.2, %v573_v46  ;;  %vm578_vm6 = vcmp.ge.f32.partialorder %v574_v47, 0.0  ;;  %v582_v54 = vmul.f32 0.2, %v574_v47 }
 0x25f   :  { %v566_v56 = vpop.permute.xlu1 %565  ;;  %v592_v57 = vsel %vm183_vm1, %v588_v49, -inf }
 0x260   :  { %v575_v58 = vadd.f32 %v571_v32, %v566_v56  ;;  %v360_v59 = vpop.permute.xlu0 %359  ;;  %593 = vmax.xlane.f32.xlu1 %v592_v57  ;;  %v585_v60 = vsel %vm577_vm5, %v573_v46, %v581_v53  ;;  %v586_v61 = vsel %vm578_vm6, %v574_v47, %v582_v54 }
 0x261   :  { %v381_v62 = vadd.f32 %v380_v55, %v360_v59  ;;  %v589_v63 = vadd.f32 %v585_v60, %v1723_v50  ;;  %v590_v2 = vadd.f32 %v586_v61, %v1725_v51 }
 0x262   :  { %vm579_vm7 = vcmp.ge.f32.partialorder %v575_v58, 0.0  ;;  %v583_v1 = vmul.f32 0.2, %v575_v58 }
 0x263   :  { %vm385_vm8 = vcmp.ge.f32.partialorder %v381_v62, 0.0  ;;  %v389_v3 = vmul.f32 0.2, %v381_v62  ;;  %v595_v4 = vsel %vm183_vm1, %v589_v63, -inf  ;;  %v598_v20 = vsel %vm183_vm1, %v590_v2, -inf }
 0x264   :  { %v375_v5 = vpop.permute.xlu0 %374  ;;  %v365_v6 = vpop.permute.xlu1 %364  ;;  %596 = vmax.xlane.f32.xlu0 %v595_v4  ;;  %v587_v7 = vsel %vm579_vm7, %v575_v58, %v583_v1 }
 0x265   :  { %v384_v12 = vadd.f32 %v380_v55, %v375_v5  ;;  %v382_v14 = vadd.f32 %v380_v55, %v365_v6  ;;  %v591_v18 = vadd.f32 %v587_v7, %v1731_v0  ;;  %v393_v19 = vsel %vm385_vm8, %v381_v62, %v389_v3 }
 0x266   :  { %v1738_v21 = vadd.f32 %v393_v19, %v1716_v38 }
 0x267   :  { %vm388_vm9 = vcmp.ge.f32.partialorder %v384_v12, 0.0  ;;  %v392_v22 = vmul.f32 0.2, %v384_v12  ;;  %vm386_vm10 = vcmp.ge.f32.partialorder %v382_v14, 0.0  ;;  %v390_v23 = vmul.f32 0.2, %v382_v14 }
 0x268   :  { %v370_v24 = vpop.permute.xlu1 %369  ;;  %599 = vmax.xlane.f32.xlu0 %v598_v20  ;;  %v601_v25 = vsel %vm183_vm1, %v591_v18, -inf  ;;  %v401_v32 = vsel %vm183_vm1, %v1738_v21, -inf }
 0x269   :  { %v383_v26 = vadd.f32 %v380_v55, %v370_v24  ;;  %602 = vmax.xlane.f32.xlu1 %v601_v25  ;;  %v394_v27 = vsel %vm386_vm10, %v382_v14, %v390_v23  ;;  %v396_v28 = vsel %vm388_vm9, %v384_v12, %v392_v22  ;;  %v1778_v22 = vld [vmem:[%s1869_s6] ss:$0 sm:$0xff] }
 0x26a   :  { %v398_v30 = vadd.f32 %v394_v27, %v1723_v50  ;;  %v400_v34 = vadd.f32 %v396_v28, %v1731_v0 }
 0x26b   :  { %vm387_vm11 = vcmp.ge.f32.partialorder %v383_v26, 0.0  ;;  %v391_v31 = vmul.f32 0.2, %v383_v26 }
 0x26c   :  { %402 = vmax.xlane.f32.xlu0 %v401_v32  ;;  %v404_v33 = vsel %vm183_vm1, %v398_v30, -inf  ;;  %v410_v37 = vsel %vm183_vm1, %v400_v34, -inf }
 0x26d   :  { %405 = vmax.xlane.f32.xlu1 %v404_v33  ;;  %v395_v35 = vsel %vm387_vm11, %v383_v26, %v391_v31 }
 0x26e   :  { %v399_v36 = vadd.f32 %v395_v35, %v1725_v51 }
 0x270   :  { %v407_v39 = vsel %vm183_vm1, %v399_v36, -inf }
 0x271   :  { %411 = vmax.xlane.f32.xlu1 %v410_v37  ;;  %408 = vmax.xlane.f32.xlu0 %v407_v39 }
 0x2ed   :  { %v594_v40 = vpop.xlane.xlu1 %593 }
 0x2ee   :  { %v604_v41 = vsub.f32 %v588_v49, %v594_v40 }
 0x2f0   :  { %v608_v42 = vmul.f32 1.442695, %v604_v41 }
 0x2f1   :  { %v597_v44 = vpop.xlane.xlu0 %596 }
 0x2f2   :  { %1425 = vpow2.f32 %v608_v42  ;;  %v605_v45 = vsub.f32 %v589_v63, %v597_v44 }
 0x2f4   :  { %v610_v46 = vmul.f32 1.442695, %v605_v45 }
 0x2f5   :  { %v600_v47 = vpop.xlane.xlu0 %599 }
 0x2f6   :  { %1427 = vpow2.f32 %v610_v46  ;;  %v606_v48 = vsub.f32 %v590_v2, %v600_v47  ;;  %v603_v52 = vpop.xlane.xlu1 %602 }
 0x2f7   :  { %v607_v53 = vsub.f32 %v591_v18, %v603_v52 }
 0x2f8   :  { %v612_v54 = vmul.f32 1.442695, %v606_v48 }
 0x2f9   :  { %v614_v55 = vmul.f32 1.442695, %v607_v53  ;;  %v403_v63 = vpop.xlane.xlu0 %402 }
 0x2fa   :  { %1429 = vpow2.f32 %v612_v54  ;;  %v406_v1 = vpop.xlane.xlu1 %405  ;;  %v413_v3 = vsub.f32 %v1738_v21, %v403_v63  ;;  %v779_v63 = vld [vmem:[%s1870_s7 + $0x10] sm:$0xff] }
 0x2fb   :  { %1431 = vpow2.f32 %v614_v55  ;;  %v414_v2 = vsub.f32 %v398_v30, %v406_v1  ;;  %v780_v1 = vld [vmem:[%s1870_s7 + $0x18] sm:$0xff] }
 0x2fc   :  { %v1426_v56 = vpop.eup %1425  ;;  %v417_v12 = vmul.f32 1.442695, %v413_v3  ;;  %v1380_v3 = vpack.c.bf16 %v780_v1, %v779_v63 }
 0x2fd   :  { %v616_v57 = vsel %vm183_vm1, %v1426_v56, 0.0  ;;  %v419_v6 = vmul.f32 1.442695, %v414_v2 }
 0x2fe   :  { %617 = vadd.xlane.f32.xlu0 %v616_v57  ;;  %v409_v4 = vpop.xlane.xlu0 %408  ;;  %v412_v5 = vpop.xlane.xlu1 %411 }
 0x2ff   :  { %v415_v7 = vsub.f32 %v399_v36, %v409_v4  ;;  %v416_v14 = vsub.f32 %v400_v34, %v412_v5  ;;  %1433 = vpow2.f32 %v419_v6 }
 0x300   :  { %v1750_v58 = vpop.eup %1427  ;;  %1435 = vpow2.f32 %v417_v12 }
 0x301   :  { %v619_v49 = vsel %vm183_vm1, %v1750_v58, 0.0  ;;  %v421_v18 = vmul.f32 1.442695, %v415_v7  ;;  %v423_v15 = vmul.f32 1.442695, %v416_v14 }
 0x302   :  { %620 = vadd.xlane.f32.xlu1 %v619_v49 }
 0x303   :  { %1437 = vpow2.f32 %v421_v18 }
 0x304   :  { %v1754_v59 = vpop.eup %1429  ;;  %1439 = vpow2.f32 %v423_v15 }
 0x305   :  { %v1756_v60 = vpop.eup %1431  ;;  %v622_v61 = vsel %vm183_vm1, %v1754_v59, 0.0 }
 0x306   :  { %v625_v62 = vsel %vm183_vm1, %v1756_v60, 0.0  ;;  %623 = vadd.xlane.f32.xlu0 %v622_v61 }
 0x307   :  { %626 = vadd.xlane.f32.xlu1 %v625_v62 }
 0x309   :  { %v1434_v16 = vpop.eup %1433 }
 0x30a   :  { %v1436_v10 = vpop.eup %1435  ;;  %v428_v11 = vsel %vm183_vm1, %v1434_v16, 0.0 }
 0x318   :  { %1420 = vrot.lane.b32.xlu1 %v1419_v17, %s1554_s2  ;;  %v425_v17 = vsel %vm183_vm1, %v1436_v10, 0.0 }
 0x31c   :  { %1415 = vrot.lane.b32.xlu0 %v1414_v13, %s1554_s2  ;;  %v1438_v13 = vpop.eup %1437 }
 0x31d   :  { %v1440_v19 = vpop.eup %1439  ;;  %v431_v20 = vsel %vm183_vm1, %v1438_v13, 0.0 }
 0x31e   :  { %v434_v21 = vsel %vm183_vm1, %v1440_v19, 0.0 }
 0x33b   :  { %429 = vadd.xlane.f32.xlu0 %v428_v11 }
 0x33c   :  { %426 = vadd.xlane.f32.xlu1 %v425_v17 }
 0x33f   :  { %432 = vadd.xlane.f32.xlu0 %v431_v20 }
 0x340   :  { %435 = vadd.xlane.f32.xlu1 %v434_v21 }
 0x355   :  { %648 = vrot.lane.b32.xlu0 %v1778_v22, %s1554_s2 }
 0x38b   :  { %v618_v23 = vpop.xlane.xlu0 %617 }
 0x38c   :  { %1441 = vrcp.f32 %v618_v23 }
 0x38f   :  { %v621_v24 = vpop.xlane.xlu1 %620 }
 0x390   :  { %1443 = vrcp.f32 %v621_v24 }
 0x393   :  { %v624_v25 = vpop.xlane.xlu0 %623 }
 0x394   :  { %v627_v26 = vpop.xlane.xlu1 %626  ;;  %1445 = vrcp.f32 %v624_v25 }
 0x395   :  { %1447 = vrcp.f32 %v627_v26 }
 0x396   :  { %v1442_v27 = vpop.eup %1441 }
 0x397   :  { %v1416_v28 = vpop.permute.xlu0 %1415  ;;  %v632_v30 = vmul.f32 %v1442_v27, %v1426_v56 }
 0x398   :  { %v1421_v31 = vpop.permute.xlu1 %1420  ;;  %v1418_v32 = vunpack.i.h.bf16 %v1416_v28  ;;  %v1417_v33 = vunpack.i.l.bf16 %v1416_v28 }
 0x399   :  { %v1423_v34 = vunpack.i.h.bf16 %v1421_v31  ;;  %v1422_v35 = vunpack.i.l.bf16 %v1421_v31  ;;  %1303 = vmatprep.mubr.msk.f32.mxu1 %vm183_vm1, %v632_v30 }
 0x39a   :  { %v1368_v36 = vpack.c.bf16 %v1418_v32, %v1417_v33  ;;  %v1444_v39 = vpop.eup %1443 }
 0x39b   :  { %v1372_v37 = vpack.c.bf16 %v1423_v34, %v1422_v35  ;;  %v633_v41 = vmul.f32 %v1444_v39, %v1750_v58  ;;  %v1193_v34 = vld [vmem:[%s1872_s9] ss:$0 sm:$0xff] }
 0x39c   :  { %1369 = vmatprep.subr.bf16.mxu1 %v1368_v36 }
 0x39d   :  { %1371 = vmatpush3.bf16.msra.mxu1 %v1368_v36 }
 0x39e   :  { %1373 = vmatprep.subr.bf16.mxu1 %v1372_v37  ;;  %v1446_v40 = vpop.eup %1445 }
 0x39f   :  { %v1448_v42 = vpop.eup %1447  ;;  %v634_v44 = vmul.f32 %v1446_v40, %v1754_v59  ;;  %v777_v59 = vld [vmem:[%s1870_s7] sm:$0xff] }
 0x3a0   :  { %v635_v45 = vmul.f32 %v1448_v42, %v1756_v60  ;;  %v778_v60 = vld [vmem:[%s1870_s7 + $0x8] sm:$0xff] }
 0x3a1   :  { %1375 = vmatpush3.bf16.msra.mxu1 %v1372_v37  ;;  %v1376_v61 = vpack.c.bf16 %v778_v60, %v777_v59 }
 0x3a2   :  { %1384 = vmatprep.subr.bf16.mxu1 %v1549_v8 }
 0x3a3   :  { %1377 = vmatprep.subr.bf16.mxu0 %v1376_v61 }
 0x3a4   :  { %1304 = vmatmul.mubr.msk.f32.vlgmr.msra.gmra.mrb[2].mxu1 %vm183_vm1, %v633_v41 }
 0x3a5   :  { %1306 = vmatprep.mubr.msk.f32.mxu1 %vm183_vm1, %v634_v44 }
 0x3a8   :  { %1307 = vmatmul.mubr.msk.f32.gmra.mrb[4].mxu1 %vm183_vm1, %v635_v45 }
 0x3a9   :  { %1331 = vmatprep.mubr.msk.f32.mxu1 %vm1550_vm2, %v1551_v9 }
 0x3c8   :  { %v430_v46 = vpop.xlane.xlu0 %429 }
 0x3c9   :  { %v427_v47 = vpop.xlane.xlu1 %426  ;;  %1449 = vrcp.f32 %v430_v46 }
 0x3ca   :  { %1451 = vrcp.f32 %v427_v47  ;;  %v781_v47 = vld [vmem:[%s1871_s8] sm:$0x1] }
 0x3cc   :  { %v433_v48 = vpop.xlane.xlu0 %432 }
 0x3cd   :  { %v436_v52 = vpop.xlane.xlu1 %435  ;;  %1453 = vrcp.f32 %v433_v48 }
 0x3ce   :  { %1455 = vrcp.f32 %v436_v52 }
 0x3d0   :  { %v649_v62 = vpop.permute.xlu0 %648 }
 0x3d3   :  { %v1450_v53 = vpop.eup %1449 }
 0x3d4   :  { %v1452_v54 = vpop.eup %1451  ;;  %v442_v55 = vmul.f32 %v1450_v53, %v1434_v16 }
 0x3d5   :  { %v441_v56 = vmul.f32 %v1452_v54, %v1436_v10 }
 0x3d7   :  { %v1454_v57 = vpop.eup %1453  ;;  %1289 = vmatprep.mubr.msk.f32.mxu0 %vm183_vm1, %v441_v56 }
 0x3d8   :  { %v1456_v58 = vpop.eup %1455  ;;  %1290 = vmatmul.mubr.msk.f32.vlgmr.msra.gmra.mrb[8].mxu0 %vm183_vm1, %v442_v55  ;;  %v443_v49 = vmul.f32 %v1454_v57, %v1438_v13 }
 0x3d9   :  { %v444_v9 = vmul.f32 %v1456_v58, %v1440_v19  ;;  %1379 = vmatpush3.bf16.msra.mxu0 %v1376_v61 }
 0x3da   :  { %1292 = vmatprep.mubr.msk.f32.mxu0 %vm183_vm1, %v443_v49  ;;  %1381 = vmatprep.subr.bf16.mxu0 %v1380_v3 }
 0x3dc   :  { %1293 = vmatmul.mubr.msk.f32.gmra.mrb[10].mxu0 %vm183_vm1, %v444_v9 }
 0x3dd   :  { %1383 = vmatpush3.bf16.msra.mxu0 %v1380_v3 }
 0x477   :  { %v1305_v2 = vpop.f32.mrb[2].mxu1 }
 0x478   :  { %v729_v4 = vpop.f32.mrb[3].mxu1  ;;  %v735_v12 = vadd.f32 %v1305_v2, %v649_v62 }
 0x479   :  { %v730_v5 = vadd.f32 %v729_v4, %v649_v62 }
 0x47b   :  { %v1308_v6 = vpop.f32.mrb[4].mxu1  ;;  %752 = vrot.lane.b32.xlu1 %v730_v5, %s1555_s25 }
 0x47c   :  { %v739_v7 = vpop.f32.mrb[5].mxu1  ;;  %v745_v18 = vadd.f32 %v1308_v6, %v649_v62 }
 0x47d   :  { %v740_v14 = vadd.f32 %v739_v7, %v649_v62 }
 0x47f   :  { %756 = vrot.lane.b32.xlu0 %v740_v14, %s1555_s25  ;;  %754 = vrot.lane.b32.xlu1 %v735_v12, %s1555_s25 }
 0x483   :  { %758 = vrot.lane.b32.xlu1 %v745_v18, %s1555_s25 }
 0x4ab   :  { %v1291_v15 = vpop.f32.mrb[8].mxu0 }
 0x4ac   :  { %v535_v16 = vadd.f32 %v1291_v15, %v1778_v22  ;;  %v529_v10 = vpop.f32.mrb[9].mxu0 }
 0x4ad   :  { %v530_v11 = vadd.f32 %v1778_v22, %v529_v10 }
 0x4ae   :  { %549 = vst.msk [vmem:[#allocation2 + $0x8] sm:$0xff] %vm85_vm0, %v535_v16 }
 0x4af   :  { %548 = vst.msk [vmem:[#allocation2] sm:$0xff] %vm85_vm0, %v530_v11  ;;  %v1294_v13 = vpop.f32.mrb[10].mxu0 }
 0x4b0   :  { %v545_v17 = vadd.f32 %v1294_v13, %v1778_v22  ;;  %v539_v19 = vpop.f32.mrb[11].mxu0 }
 0x4b1   :  { %v540_v20 = vadd.f32 %v1778_v22, %v539_v19 }
 0x4b2   :  { %551 = vst.msk [vmem:[#allocation2 + $0x18] sm:$0xff] %vm85_vm0, %v545_v17 }
 0x4b3   :  { %550 = vst.msk [vmem:[#allocation2 + $0x10] sm:$0xff] %vm85_vm0, %v540_v20 }
 0x4ed   :  { %v753_v21 = vpop.permute.xlu1 %752 }
 0x4ee   :  { %765 = vst.msk [vmem:[#allocation2] sm:$0xff] %vm764_vm12, %v753_v21 }
 0x4f1   :  { %v757_v23 = vpop.permute.xlu0 %756  ;;  %v755_v24 = vpop.permute.xlu1 %754 }
 0x4f2   :  { %767 = vst.msk [vmem:[#allocation2 + $0x10] sm:$0xff] %vm764_vm12, %v757_v23  ;;  %766 = vst.msk [vmem:[#allocation2 + $0x8] sm:$0xff] %vm764_vm12, %v755_v24 }
 0x4f5   :  { %v759_v25 = vpop.permute.xlu1 %758  ;;  %v769_v26 = vld [vmem:[#allocation2] sm:$0xff] }
 0x4f6   :  { %768 = vst.msk [vmem:[#allocation2 + $0x18] sm:$0xff] %vm764_vm12, %v759_v25  ;;  %v773_v27 = vmax.f32 %v769_v26, 0.0 }
 0x4f8   :  { %1317 = vmatprep.mubr.msk.f32.mxu0 %vm183_vm1, %v773_v27 }
 0x4f9   :  { %v770_v28 = vld [vmem:[#allocation2 + $0x8] sm:$0xff]  ;;  %v771_v30 = vld [vmem:[#allocation2 + $0x10] sm:$0xff] }
 0x4fa   :  { %v774_v22 = vmax.f32 %v770_v28, 0.0  ;;  %v775_v31 = vmax.f32 %v771_v30, 0.0 }
 0x4fc   :  { %1318 = vmatmul.mubr.msk.f32.vlgmr.msra.gmra.mrb[12].mxu0 %vm183_vm1, %v774_v22 }
 0x4fd   :  { %1320 = vmatprep.mubr.msk.f32.mxu0 %vm183_vm1, %v775_v31  ;;  %v772_v32 = vld [vmem:[#allocation2 + $0x18] sm:$0xff] }
 0x4fe   :  { %v776_v33 = vmax.f32 %v772_v32, 0.0 }
 0x500   :  { %1321 = vmatmul.mubr.msk.f32.gmra.mrb[14].mxu0 %vm183_vm1, %v776_v33 }
 0x5cf   :  { %v1319_v35 = vpop.f32.mrb[12].mxu0 }
 0x5d0   :  { %v862_v36 = vpop.f32.mrb[13].mxu0  ;;  %v958_v37 = vmul.f32 %v1319_v35, %v1193_v34 }
 0x5d1   :  { %v1385_v39 = vpack.c.bf16 %v1319_v35, %v862_v36  ;;  %v957_v40 = vmul.f32 %v1193_v34, %v862_v36 }
 0x5d2   :  { %963 = vadd.xlane.f32.xlu1 %v958_v37 }
 0x5d3   :  { %961 = vadd.xlane.f32.xlu0 %v957_v40  ;;  %v1322_v41 = vpop.f32.mrb[14].mxu0  ;;  %1386 = vmatpush3.bf16.xpose.msra.mxu1 %v1385_v39 }
 0x5d4   :  { %1391 = vmatprep.subr.bf16.mxu0 %v1385_v39  ;;  %v872_v42 = vpop.f32.mrb[15].mxu0  ;;  %1387 = vmatprep.subr.bf16.mxu1 %v1549_v8  ;;  %v960_v46 = vmul.f32 %v1322_v41, %v1193_v34 }
 0x5d5   :  { %v1388_v44 = vpack.c.bf16 %v1322_v41, %v872_v42  ;;  %1393 = vmatpush3.bf16.msra.mxu0 %v1385_v39  ;;  %v959_v45 = vmul.f32 %v1193_v34, %v872_v42  ;;  %v1194_v42 = vld [vmem:[%s1873_s10] ss:$0 sm:$0xff] }
 0x5d7   :  { %965 = vadd.xlane.f32.xlu0 %v959_v45  ;;  %1395 = vmatprep.subr.bf16.mxu0 %v1388_v44 }
 0x5d9   :  { %1397 = vmatpush3.bf16.msra.mxu0 %v1388_v44 }
 0x5db   :  { %967 = vadd.xlane.f32.xlu0 %v960_v46  ;;  %1389 = vmatpush3.bf16.xpose.msra.mxu1 %v1388_v44 }
 0x5e2   :  { %1332 = vmatmul.mubr.f32.vlgmr.msra.gmra.mrb[6].mxu1 %v781_v47 }
 0x65f   :  { %v964_v55 = vpop.xlane.xlu1 %963 }
 0x660   :  { %v962_v48 = vpop.xlane.xlu0 %961 }
 0x664   :  { %v966_v52 = vpop.xlane.xlu0 %965 }
 0x668   :  { %v968_v56 = vpop.xlane.xlu0 %967 }
 0x6b5   :  { %v947_v53 = vpop.f32.mrb[6].mxu1 }
 0x6b6   :  { %v972_v8 = vrot.slane %v947_v53, %v379_v43  ;;  %v1333_v54 = vpop.f32.mrb[7].mxu1 }
 0x6b8   :  { %v973_v57 = vadd.f32 %v972_v8, %v962_v48  ;;  %v974_v58 = vadd.f32 %v972_v8, %v964_v55  ;;  %v975_v49 = vadd.f32 %v972_v8, %v966_v52  ;;  %v976_v9 = vadd.f32 %v972_v8, %v968_v56 }
 0x6ba   :  { %vm977_vm13 = vcmp.ge.f32.partialorder %v973_v57, 0.0  ;;  %v981_v59 = vmul.f32 0.2, %v973_v57  ;;  %vm978_vm14 = vcmp.ge.f32.partialorder %v974_v58, 0.0  ;;  %v982_v60 = vmul.f32 0.2, %v974_v58 }
 0x6bb   :  { %vm979_vm15 = vcmp.ge.f32.partialorder %v975_v49, 0.0  ;;  %v983_v61 = vmul.f32 0.2, %v975_v49  ;;  %vm980_vm0 = vcmp.ge.f32.partialorder %v976_v9, 0.0  ;;  %v984_v62 = vmul.f32 0.2, %v976_v9 }
 0x6bc   :  { %v985_v63 = vsel %vm977_vm13, %v973_v57, %v981_v59  ;;  %v986_v1 = vsel %vm978_vm14, %v974_v58, %v982_v60 }
 0x6bd   :  { %v989_v29 = vadd.f32 %v985_v63, %v1716_v38  ;;  %v990_v43 = vadd.f32 %v986_v1, %v1723_v50  ;;  %v987_v2 = vsel %vm979_vm15, %v975_v49, %v983_v61  ;;  %v988_v3 = vsel %vm980_vm0, %v976_v9, %v984_v62 }
 0x6be   :  { %v991_v6 = vadd.f32 %v987_v2, %v1725_v51  ;;  %v992_v7 = vadd.f32 %v988_v3, %v1731_v0 }
 0x6bf   :  { %v993_v4 = vsel %vm183_vm1, %v989_v29, -inf  ;;  %v996_v5 = vsel %vm183_vm1, %v990_v43, -inf }
 0x6c0   :  { %994 = vmax.xlane.f32.xlu1 %v993_v4  ;;  %997 = vmax.xlane.f32.xlu0 %v996_v5  ;;  %v999_v12 = vsel %vm183_vm1, %v991_v6, -inf  ;;  %v1002_v14 = vsel %vm183_vm1, %v992_v7, -inf }
 0x6c4   :  { %1000 = vmax.xlane.f32.xlu1 %v999_v12  ;;  %1003 = vmax.xlane.f32.xlu0 %v1002_v14 }
 0x74d   :  { %v998_v38 = vpop.xlane.xlu0 %997  ;;  %v995_v50 = vpop.xlane.xlu1 %994 }
 0x74e   :  { %v1006_v18 = vsub.f32 %v990_v43, %v998_v38  ;;  %v1005_v15 = vsub.f32 %v989_v29, %v995_v50 }
 0x750   :  { %v1011_v16 = vmul.f32 1.442695, %v1006_v18  ;;  %v1009_v10 = vmul.f32 1.442695, %v1005_v15 }
 0x751   :  { %v1004_v11 = vpop.xlane.xlu0 %1003  ;;  %v1001_v13 = vpop.xlane.xlu1 %1000 }
 0x752   :  { %1457 = vpow2.f32 %v1011_v16  ;;  %v1008_v51 = vsub.f32 %v992_v7, %v1004_v11  ;;  %v1007_v17 = vsub.f32 %v991_v6, %v1001_v13 }
 0x753   :  { %1459 = vpow2.f32 %v1009_v10 }
 0x754   :  { %v1015_v0 = vmul.f32 1.442695, %v1008_v51  ;;  %v1013_v19 = vmul.f32 1.442695, %v1007_v17 }
 0x756   :  { %1461 = vpow2.f32 %v1015_v0 }
 0x757   :  { %1463 = vpow2.f32 %v1013_v19 }
 0x75c   :  { %v1458_v20 = vpop.eup %1457 }
 0x75d   :  { %v1460_v21 = vpop.eup %1459  ;;  %v1020_v23 = vsel %vm183_vm1, %v1458_v20, 0.0 }
 0x75e   :  { %1021 = vadd.xlane.f32.xlu0 %v1020_v23  ;;  %v1017_v24 = vsel %vm183_vm1, %v1460_v21, 0.0 }
 0x75f   :  { %1018 = vadd.xlane.f32.xlu1 %v1017_v24 }
 0x760   :  { %v1462_v25 = vpop.eup %1461 }
 0x761   :  { %v1464_v26 = vpop.eup %1463  ;;  %v1026_v27 = vsel %vm183_vm1, %v1462_v25, 0.0 }
 0x762   :  { %1027 = vadd.xlane.f32.xlu0 %v1026_v27  ;;  %v1023_v28 = vsel %vm183_vm1, %v1464_v26, 0.0 }
 0x763   :  { %1024 = vadd.xlane.f32.xlu1 %v1023_v28 }
 0x7eb   :  { %v1022_v30 = vpop.xlane.xlu0 %1021 }
 0x7ec   :  { %1465 = vrcp.f32 %v1022_v30  ;;  %v1019_v22 = vpop.xlane.xlu1 %1018 }
 0x7ed   :  { %1467 = vrcp.f32 %v1019_v22 }
 0x7ef   :  { %v1028_v31 = vpop.xlane.xlu0 %1027 }
 0x7f0   :  { %1469 = vrcp.f32 %v1028_v31  ;;  %v1025_v32 = vpop.xlane.xlu1 %1024 }
 0x7f1   :  { %1471 = vrcp.f32 %v1025_v32 }
 0x7f6   :  { %v1466_v33 = vpop.eup %1465 }
 0x7f7   :  { %v1468_v34 = vpop.eup %1467  ;;  %v1034_v35 = vmul.f32 %v1466_v33, %v1458_v20 }
 0x7f8   :  { %v1033_v36 = vmul.f32 %v1468_v34, %v1460_v21 }
 0x7fa   :  { %v1470_v37 = vpop.eup %1469  ;;  %1342 = vmatprep.mubr.msk.f32.mxu0 %vm183_vm1, %v1033_v36 }
 0x7fb   :  { %v1472_v39 = vpop.eup %1471  ;;  %1343 = vmatmul.mubr.msk.f32.vlgmr.msra.gmra.mrb[16].mxu0 %vm183_vm1, %v1034_v35  ;;  %v1036_v40 = vmul.f32 %v1470_v37, %v1462_v25 }
 0x7fc   :  { %v1035_v41 = vmul.f32 %v1472_v39, %v1464_v26 }
 0x7fe   :  { %1345 = vmatprep.mubr.msk.f32.mxu0 %vm183_vm1, %v1035_v41 }
 0x7ff   :  { %1346 = vmatmul.mubr.msk.f32.gmra.mrb[18].mxu0 %vm183_vm1, %v1036_v40 }
 0x8ce   :  { %v1344_v44 = vpop.f32.mrb[16].mxu0 }
 0x8cf   :  { %v1127_v45 = vadd.f32 %v1344_v44, %v1194_v42  ;;  %v1121_v46 = vpop.f32.mrb[17].mxu0 }
 0x8d0   :  { %v1122_v47 = vadd.f32 %v1194_v42, %v1121_v46 }
 0x8d1   :  { %1141 = vst [vmem:[#allocation10 + $0x8] sm:$0xff] %v1127_v45 }
 0x8d2   :  { %1140 = vst [vmem:[#allocation10] sm:$0xff] %v1122_v47  ;;  %v1347_v48 = vpop.f32.mrb[18].mxu0 }
 0x8d3   :  { %v1137_v52 = vadd.f32 %v1347_v48, %v1194_v42  ;;  %v1131_v53 = vpop.f32.mrb[19].mxu0 }
 0x8d4   :  { %v1132_v8 = vadd.f32 %v1194_v42, %v1131_v53 }
 0x8d5   :  { %1143 = vst [vmem:[#allocation10 + $0x18] sm:$0xff] %v1137_v52 }
 0x8d6   :  { %1142 = vst [vmem:[#allocation10 + $0x10] sm:$0xff] %v1132_v8 }
 0x8d7   :  { %1528 = shalt.err (!%p1525_p6)
}
 0x8d8   :  { %s1529_s13 = scalar_lea.hbm %s1874_s11, 512 }
 0x8d9   :  { %p1530_p7 = scmp.ne.s32.totalorder %s1874_s11, %s1529_s13  ;;  %p1533_p8 = scmp.lt.u32.totalorder %s1529_s13, %s1874_s11 }
 0x8db   :  { %p1535_p9 = pnand %p1533_p8, %p1530_p7 }
 0x8dd   :  { %1538 = shalt.err (!%p1535_p9)
}
 0x8de   :  { %1155 = dma.vmem_to_hbm [thread:$0]  %s1150_s4, 512, %s1874_s11, [#allocation7], %s1546_s26, %s1546_s26, %s1547_s0  }
 0x8df   :  { %1543 = dma.done.wait [#allocation7], 512  }
 0x8e0   :  { %1544 = vsyncadd [#allocation7], 4294966784 }
 0x8e1   :  { %1159 = vsyncpa [#allocation6], 1 }
 0x8e2   :  { %1160 = vsyncpa [#allocation9], 1 }
 0x8e3   :  { %1161 = vsyncpa [#allocation7], 1 }

</bundles_post_ra>
